<compile_context>
chip_gen: v6e
topology: v6e:2x2x1
jax: 0.10.0
libtpu: 0.0.40
codegen_flags: <defaults>
</compile_context>

<pallas_src>
import jax
import jax.numpy as jnp
from jax import lax
from jax.experimental import pallas as pl
from jax.experimental.pallas import tpu as pltpu

KSIZE = 7
PAD = KSIZE // 2


def spatial_attention_kernel(t_ref, x_ref, o_ref):
    # t_ref: VMEM (2*HWp, HWp) bf16 -- fused [avg; max] Toeplitz conv operator
    #        (resident across the whole grid, single-buffered).
    # x_ref: VMEM (Bb, C, HWp)      -- Bb batch elements, lane-dense last dim.
    # o_ref: VMEM (Bb, C, HWp)
    x = x_ref[...]                                        # keep input dtype
    xf = x.astype(jnp.float32)                            # f32 only for reductions

    # Channel reductions (1/C of torch.mean is folded into the avg rows of T).
    s = jnp.sum(xf, axis=1)                               # (Bb, HWp)
    mx = jnp.max(xf, axis=1)                              # (Bb, HWp)

    # 7x7 "same" conv over the [avg, max] maps as ONE MXU matmul with M=Bb
    # (zero padding is encoded inside the Toeplitz operator, f32 accumulate).
    lhs = jnp.concatenate([s, mx], axis=-1).astype(jnp.bfloat16)   # (Bb, 2*HWp)
    logits = jnp.dot(lhs, t_ref[...],
                     preferred_element_type=jnp.float32)  # (Bb, HWp)

    score = jax.nn.sigmoid(logits)                        # (Bb, HWp), EUP exp
    # Lane-dense broadcast multiply + unmasked store, in the input dtype.
    o_ref[...] = (x * score[:, None, :].astype(x.dtype)).astype(o_ref.dtype)


def _round_up(n, m):
    return ((n + m - 1) // m) * m


def build_conv_operator(w, C, H, W):
    """Fused dense Toeplitz operator for the 7x7 'same' cross-correlation.

    Returns T of shape (2*HWp, HWp) bf16 with HWp = H*W padded to a multiple of
    128 (lane-dense guard).  Rows [0, HW) are the avg-channel operator with the
    1/C channel mean folded in; rows [HWp, HWp+HW) are the max-channel operator.
    conv([avg;max])[p] = (concat(sum, max) @ T)[p]; zero padding is implicit.

    Build this ONCE per weight and pass it to spatial_attention(..., t=...).
    """
    HW = H * W
    hw_pad = _round_up(HW, 128)
    pos = jnp.arange(HW)
    row = pos // W
    col = pos % W
    dh = row[:, None] - row[None, :] + PAD                # (HW_q, HW_p)
    dw = col[:, None] - col[None, :] + PAD
    valid = (dh >= 0) & (dh < KSIZE) & (dw >= 0) & (dw < KSIZE)
    kh = jnp.clip(dh, 0, KSIZE - 1)
    kw = jnp.clip(dw, 0, KSIZE - 1)
    wf = w.astype(jnp.float32)
    t_avg = jnp.where(valid, wf[0, 0][kh, kw], 0.0) * (1.0 / C)
    t_max = jnp.where(valid, wf[0, 1][kh, kw], 0.0)
    pad = hw_pad - HW
    if pad:
        t_avg = jnp.pad(t_avg, ((0, pad), (0, pad)))
        t_max = jnp.pad(t_max, ((0, pad), (0, pad)))
    # bf16 operand for the MXU (f32 accumulation stays in the kernel).
    return jnp.concatenate([t_avg, t_max], axis=0).astype(jnp.bfloat16)


def _pick_block_b(B):
    """Largest divisor of B giving >= 2 grid steps (keeps both v7x TCs busy).

    On v5e/v6e (single TC) a caller may pass block_b=B for one big block.
    """
    if B < 2:
        return max(B, 1)
    for bb in range((B + 1) // 2, 0, -1):
        if B % bb == 0:
            return bb
    return 1


def spatial_attention(x, w=None, *, t=None, block_b=None, donate_x=False):
    """x: (B, C, H, W); w: (1, 2, 7, 7) OIHW (Conv2d(2, 1, 7, padding=3, bias=False)).

    Pass a precomputed t = build_conv_operator(w, C, H, W) to keep the operator
    construction off the hot path.
    """
    B, C, H, W = x.shape
    HW = H * W
    hw_pad = _round_up(HW, 128)
    if t is None:
        t = build_conv_operator(w, C, H, W)               # cache per weight!
    assert t.shape == (2 * hw_pad, hw_pad)

    Bb = block_b if block_b is not None else _pick_block_b(B)
    assert B % Bb == 0, "block_b must divide B"
    grid_b = B // Bb

    x_flat = x.reshape(B, C, HW)                          # lane-dense view (free)
    if hw_pad != HW:
        # Lane-density guard: keep the last dim a multiple of 128 so the
        # dominant writeback uses unmasked stores. Extra cols are zero and the
        # matching T rows/cols are zero, so they never affect real outputs.
        x_flat = jnp.pad(x_flat, ((0, 0), (0, 0), (0, hw_pad - HW)))

    # Right-sized VMEM budget: T single-buffered + double-buffered x/out blocks,
    # plus generous compile headroom (still far below v7x's 64 MiB).
    t_bytes = t.size * t.dtype.itemsize
    xblk_bytes = Bb * C * hw_pad * x.dtype.itemsize
    vmem_bytes = int(t_bytes + 4 * xblk_bytes + (8 << 20))

    # T: same block every step -> resident; single-buffer it.
    try:
        t_spec = pl.BlockSpec((2 * hw_pad, hw_pad), lambda b: (0, 0),
                              pipeline_mode=pl.Buffered(1))
    except TypeError:  # defensive: older jax without pipeline_mode kwarg
        t_spec = pl.BlockSpec((2 * hw_pad, hw_pad), lambda b: (0, 0))

    out_flat = pl.pallas_call(
        spatial_attention_kernel,
        out_shape=jax.ShapeDtypeStruct((B, C, hw_pad), x.dtype),
        grid_spec=pltpu.PrefetchScalarGridSpec(
            num_scalar_prefetch=0,
            grid=(grid_b,),
            in_specs=[
                t_spec,
                pl.BlockSpec((Bb, C, hw_pad), lambda b: (b, 0, 0)),
            ],
            out_specs=pl.BlockSpec((Bb, C, hw_pad), lambda b: (b, 0, 0)),
        ),
        compiler_params=pltpu.CompilerParams(
            dimension_semantics=("parallel",),
            vmem_limit_bytes=vmem_bytes),
        input_output_aliases=({1: 0} if donate_x else {}),
    )(t, x_flat)

    if hw_pad != HW:
        out_flat = out_flat[..., :HW]
    return out_flat.reshape(B, C, H, W)


def spatial_attention_ref(x, w):
    """Pure-JAX reference mirroring the PyTorch module."""
    avg = jnp.mean(x, axis=1, keepdims=True)
    mx = jnp.max(x, axis=1, keepdims=True)
    cat = jnp.concatenate([avg, mx], axis=1)
    out = lax.conv_general_dilated(
        cat, w, window_strides=(1, 1), padding="SAME",
        dimension_numbers=("NCHW", "OIHW", "NCHW"))
    return x * jax.nn.sigmoid(out)


if __name__ == "__main__":
    key = jax.random.PRNGKey(0)
    kx, kw = jax.random.split(key)

    B, C, H, W = 2, 4, 16, 16
    x = jax.random.normal(kx, (B, C, H, W), dtype=jnp.float32)
    # Deterministic synthetic conv weights (Conv2d(2, 1, 7, padding=3, bias=False)).
    w = jax.random.normal(kw, (1, 2, KSIZE, KSIZE), dtype=jnp.float32) * 0.1

    # Build the conv operator once (hoisted off the hot path), then run.
    t_op = jax.block_until_ready(build_conv_operator(w, C, H, W))
    out = jax.block_until_ready(spatial_attention(x, t=t_op))

    ref = spatial_attention_ref(x, w)
    assert out.shape == ref.shape
    max_err = jnp.max(jnp.abs(out - ref))
    # Tolerance covers the bf16 MXU operands (f32 accumulation) vs XLA f32 conv.
    assert jnp.allclose(out, ref, atol=2e-2, rtol=2e-2), f"max err {max_err}"

    print("KERNEL_OK")
</pallas_src>

<mosaic_0001>
module attributes {stable_mosaic.version = 11 : i64} {
  func.func @spatial_attention_kernel(%arg0: i32, %arg1: memref<512x256xbf16, #tpu.memory_space<vmem>>, %arg2: memref<1x4x256xf32, #tpu.memory_space<vmem>>, %arg3: memref<1x4x256xf32, #tpu.memory_space<vmem>>) attributes {dimension_semantics = [#tpu.dimension_semantics<parallel>], iteration_bounds = array<i64: 2>, scalar_prefetch = 0 : i64, scratch_operands = 0 : i64, tpu.core_type = #tpu.core_type<tc>, window_params = [{pipeline_mode = #tpu.pipeline_mode<synchronous>, transform_indices = @transform_0, window_bounds = array<i64: 512, 256>}, {transform_indices = @transform_1, window_bounds = array<i64: 1, 4, 256>}, {transform_indices = @transform_2, window_bounds = array<i64: 1, 4, 256>}]} {
    %c0 = arith.constant 0 : index
    %c0_0 = arith.constant 0 : index
    %c0_1 = arith.constant 0 : index
    %0 = vector.load %arg2[%c0, %c0_0, %c0_1] : memref<1x4x256xf32, #tpu.memory_space<vmem>>, vector<1x4x256xf32>
    %cst = arith.constant dense<0.000000e+00> : vector<1x256xf32>
    %1 = vector.multi_reduction <add>, %0, %cst [1] : vector<1x4x256xf32> to vector<1x256xf32>
    %cst_2 = arith.constant dense<0xFF800000> : vector<1x256xf32>
    %2 = vector.multi_reduction <maximumf>, %0, %cst_2 [1] : vector<1x4x256xf32> to vector<1x256xf32>
    %3 = tpu.concatenate %1, %2 in 1 : vector<1x256xf32>, vector<1x256xf32> -> vector<1x512xf32>
    %4 = arith.truncf %3 : vector<1x512xf32> to vector<1x512xbf16>
    %c0_3 = arith.constant 0 : index
    %c0_4 = arith.constant 0 : index
    %5 = vector.load %arg1[%c0_3, %c0_4] : memref<512x256xbf16, #tpu.memory_space<vmem>>, vector<512x256xbf16>
    %cst_5 = arith.constant dense<0.000000e+00> : vector<1x256xf32>
    %6 = tpu.matmul %4, %5, %cst_5 {dimension_numbers = #tpu.dot_dimension_numbers<[1], [0], [0], [1], [0, 0, 1, 1], [], []>} : vector<1x512xbf16>, vector<512x256xbf16>, vector<1x256xf32> -> vector<1x256xf32>
    %7 = arith.negf %6 : vector<1x256xf32>
    %8 = math.exp %7 : vector<1x256xf32>
    %cst_6 = arith.constant 1.000000e+00 : f32
    %9 = vector.broadcast %cst_6 : f32 to vector<1x256xf32>
    %10 = arith.addf %9, %8 : vector<1x256xf32>
    %11 = arith.divf %9, %10 : vector<1x256xf32>
    %12 = vector.shape_cast %11 : vector<1x256xf32> to vector<1x1x256xf32>
    %13 = vector.broadcast %12 : vector<1x1x256xf32> to vector<1x4x256xf32>
    %14 = arith.mulf %0, %13 : vector<1x4x256xf32>
    %c0_7 = arith.constant 0 : index
    %c0_8 = arith.constant 0 : index
    %c0_9 = arith.constant 0 : index
    %15 = vector.load %arg3[%c0_7, %c0_8, %c0_9] : memref<1x4x256xf32, #tpu.memory_space<vmem>>, vector<1x4x256xf32>
    tpu.vector_store %arg3[%c0_7, %c0_8, %c0_9], %14 {strides = array<i32>} : memref<1x4x256xf32, #tpu.memory_space<vmem>>, vector<1x4x256xf32>,
    return
  }
  func.func @transform_0(%arg0: i32) -> (i32, i32) {
    %c0_i32 = arith.constant 0 : i32
    %c0_i32_0 = arith.constant 0 : i32
    %c0_i32_1 = arith.constant 0 : i32
    return %c0_i32, %c0_i32_0 : i32, i32
  }
  func.func @transform_1(%arg0: i32) -> (i32, i32, i32) {
    %c0_i32 = arith.constant 0 : i32
    %c0_i32_0 = arith.constant 0 : i32
    %c0_i32_1 = arith.constant 0 : i32
    return %arg0, %c0_i32, %c0_i32_0 : i32, i32, i32
  }
  func.func @transform_2(%arg0: i32) -> (i32, i32, i32) {
    %c0_i32 = arith.constant 0 : i32
    %c0_i32_0 = arith.constant 0 : i32
    %c0_i32_1 = arith.constant 0 : i32
    return %arg0, %c0_i32, %c0_i32_0 : i32, i32, i32
  }
}

</mosaic_0001>

<bundles_post_ra>
// kernel: tpu_custom_call.1
= control target key start
LH: loop header
LB: loop body
LE: loop exit
PB: predicated region body
PF: predicated region fallthrough
CT: control target
= control target key end

     0   :  { %7 = vsyncpa [#allocation3], 0  ;;  %s1365_s0 = inlined_call_operand.hbm [shape: bf16[512,256], index: 0, kind: input, shape index: {}]   ;;  %s1366_s1 = inlined_call_operand.hbm [shape: f32[2,4,256], index: 1, kind: input, shape index: {}]   ;;  %s1367_s2 = inlined_call_operand.hbm [shape: f32[2,4,256], index: 2, kind: output, shape index: {}]  }
   0x1   :  { %8 = vsyncpa [#allocation6], 0 }
   0x2   :  { %10 = vsyncpa [#allocation6 + $0x1], 0 }
   0x3   :  { %11 = vsyncpa [#allocation4], 0 }
   0x4   :  { %13 = vsyncpa [#allocation4 + $0x1], 0  ;;  %s1193_s9 = smov 0   ;;  %s1195_s10 = smov 0  }
   0x5   :  { %s1197_s11 = smov 0   ;;  %s1199_s12 = smov 0  }
   0x6 LB: > { %s1214_s13 = sadd.s32 4294967295, %s1171_s12   ;;  %s801_s14 = sadd.s32 4294967294, %s1171_s12   ;;  %s1171_s12 = sphi %s1199_s12, %s1389_s12   ;;  %s1167_s11 = sphi %s1197_s11, %s1388_s11   ;;  %s1163_s10 = sphi %s1195_s10, %s1387_s10   ;;  %s1159_s9 = sphi %s1193_s9, %s1386_s9  }
   0x7   : > { %p60_p0 = scmp.ne.s32.totalorder %s1163_s10, %s1159_s9  ;;  %p1368_p1 = scmp.eq.s32.totalorder %s1214_s13, 0 }
   0x8   : > { %p90_p3 = scmp.eq.s32.totalorder %s801_s14, 1  ;;  %p802_p5 = scmp.ge.s32.totalorder %s1171_s12, 1 }
   0x9   : > { %p1223_p4 = por %p1368_p1, %p60_p0  ;;  %p97_p7 = scmp.lt.s32.totalorder %s1171_s12, 3 }
   0xa   : > { %p1228_p6 = por %p90_p3, %p60_p0  ;;  %s1173_s18 = smov [#allocation2]  }
   0xb   : > { %s1372_s15 = scalar_select %p1223_p4, 1, 0 }
   0xc   : > { %s1373_s16 = scalar_select %p1228_p6, 1, 0 }
   0xd   : > { %p1233_p8 = pnand %p802_p5, %p97_p7  ;;  %s109_s19 = sshll.u32 %s1173_s18, 4  ;;  %s110_s19 = int_to_ptr.vmem [resolvable:$true] %s109_s19 }
   0xe   : > { %s1247_s21 = sadd.s32 1, %s1171_s12   ;;  %s47_s22 = sadd.s32 1, %s1167_s11 }
   0xf   : > { %s1374_s17 = scalar_select %p1233_p8, 1, 0 }
  0x10   : > { %p893_p9 = pneg %p1233_p8  ;;  %s44_s23 = ssub.s32 %s1171_s12, %s1247_s21 }
  0x11   : > { %s1060_s24 = scalar_lea.vmem %s110_s19, 8192  ;;  %p1068_p5 = scmp.lt.s32.totalorder %s110_s19, %s110_s19 }
  0x12   : > { %p1242_p11 = pnand %p893_p9, %p1368_p1  ;;  %p1061_p13 = scmp.ne.s32.totalorder %s110_s19, %s1060_s24 }
  0x13   : > { %p1069_p7 = scmp.lt.s32.totalorder %s1060_s24, %s1060_s24 }
  0x14   : > { %p1051_p12 = pneg %p1242_p11 }
  0x15   : > { %p1070_p10 = por %p1069_p7, %p1068_p5 }
  0x16   : > { %p1063_p0 = pnand %p1061_p13, %p1051_p12 }
  0x18   : > { %p1064_p3 = pneg %p1063_p0 }
  0x1a   : > { %p1071_p2 = pnand %p1070_p10, %p1064_p3 }
  0x1c   : > { %1074 = shalt.err (!%p1071_p2)
}
  0x1d   : > { %s1174_s25 = smov 128   ;;  %s1175_s26 = smov 8  }
  0x1e   : > { %896 = dma.hbm_to_vmem [thread:$0]  (!%p1242_p11), %s1365_s0, 8192, %s110_s19, [#allocation3], %s1174_s25, %s1174_s25, %s1175_s26  }
  0x1f   : > { %p45_p9 = scmp.eq.s32.totalorder %s44_s23, 0  ;;  %p54_p12 = scmp.ne.s32.totalorder %s1167_s11, %s1163_s10 }
  0x20   : > { %p55_p10 = scmp.eq.s32.totalorder %s1171_s12, 0  ;;  %p906_p2 = scmp.lt.s32.totalorder %s1171_s12, 2 }
  0x21   : > { %s1264_s29 = scalar_select %p45_p9, %s1167_s11, %s47_s22  }
  0x22   : > { %p56_p13 = por %p55_p10, %p54_p12  ;;  %p1376_p0 = scmp.eq.s32.totalorder %s1214_s13, 1 }
  0x23   : > { %s123_s3 = sand.u32 1, %s1167_s11   ;;  %s883_s4 = sshll.u32 %s1171_s12, 7 }
  0x24   : > { %p1268_p3 = por %p1376_p0, %p54_p12  ;;  %s805_s5 = sshll.u32 %s123_s3, 3 }
  0x25   : > { %s1277_s8 = scalar_lea.hbm %s1366_s1, %s883_s4  ;;  %s127_s14 = scalar_lea.vmem [#allocation5], %s805_s5 }
  0x26   : > { %s1377_s30 = scalar_select %p1268_p3, 1, 0 }
  0x27   : > { %s135_s18 = sshll.u32 %s127_s14, 4  ;;  %p1279_p11 = pnand %p906_p2, %p56_p13  ;;  %s136_s18 = int_to_ptr.vmem [resolvable:$true] %s135_s18 }
  0x28   : > { %s124_s20 = scalar_lea.sflag [#allocation6], %s123_s3  ;;  %s1075_s22 = scalar_lea.hbm %s1277_s8, 128 }
  0x29   : > { %p1076_p5 = scmp.ne.s32.totalorder %s1277_s8, %s1075_s22  ;;  %p1077_p7 = pneg %p1279_p11 }
  0x2a   : > { %s1080_s25 = scalar_lea.hbm %s1366_s1, 256  ;;  %p1081_p10 = scmp.lt.s32.totalorder %s1277_s8, %s1366_s1 }
  0x2b   : > { %p1078_p9 = pnand %p1077_p7, %p1076_p5  ;;  %p1082_p2 = scmp.lt.s32.totalorder %s1080_s25, %s1075_s22 }
  0x2d   : > { %p1079_p12 = pneg %p1078_p9  ;;  %p1083_p13 = por %p1082_p2, %p1081_p10 }
  0x2f   : > { %p1084_p0 = pnand %p1083_p13, %p1079_p12 }
  0x31   : > { %1087 = shalt.err (!%p1084_p0)
}
  0x32   : > { %s1088_s28 = scalar_lea.vmem %s136_s18, 128  ;;  %s1176_s3 = smov [#allocation5]  }
  0x33   : > { %p1089_p1 = scmp.ne.s32.totalorder %s136_s18, %s1088_s28  ;;  %s1093_s4 = sshll.u32 %s1176_s3, 4  ;;  %s1094_s4 = int_to_ptr.vmem [resolvable:$false] %s1093_s4 }
  0x34   : > { %s1095_s5 = scalar_lea.vmem %s1094_s4, 256  ;;  %p1096_p5 = scmp.lt.s32.totalorder %s136_s18, %s1094_s4 }
  0x35   : > { %p1091_p6 = pnand %p1089_p1, %p1077_p7  ;;  %p1097_p9 = scmp.lt.s32.totalorder %s1095_s5, %s1088_s28 }
  0x37   : > { %p1092_p3 = pneg %p1091_p6  ;;  %p1098_p4 = por %p1097_p9, %p1096_p5 }
  0x39   : > { %p1099_p8 = pnand %p1098_p4, %p1092_p3 }
  0x3b   : > { %1102 = shalt.err (!%p1099_p8)
}
  0x3c   : > { %900 = dma.hbm_to_vmem [thread:$0]  (!%p1279_p11), %s1277_s8, 128, %s136_s18, %s124_s20  }
  0x3d   : > { %p1379_p12 = scmp.ne.s32.totalorder %s1374_s17, 0 }
  0x3e   : > { %p1380_p10 = scmp.eq.s32.totalorder (!%p1379_p12), %s1214_s13, 0 }
  0x3f   : > { %144 = sbr.rel (%p1379_p12) target bundleno = 387 (0x183), region = 28 }
  0x44   : > { %1146 = dma.done.wait (%p1380_p10), [#allocation3], 8192   ;;  %p1381_p1 = pmov %p1380_p10 }
  0x45   : > { %s1304_s6 = sand.u32 1, %s1163_s10   ;;  %p1382_p4 = scmp.ne.s32.totalorder %s1372_s15, 0 }
  0x46   : > { %1148 = vsyncadd (%p1381_p1), [#allocation3], 4294959104  ;;  %s810_s7 = sshll.u32 %s1304_s6, 3  ;;  %s151_s14 = scalar_lea.sflag [#allocation6], %s1304_s6 }
  0x47   : > { %s1310_s8 = scalar_lea.vmem [#allocation5], %s810_s7 }
  0x48   : > { %1150 = dma.done.wait (%p1382_p4), %s151_s14, 128  }
  0x49   : > { %1152 = vsyncadd (%p1382_p4), %s151_s14, 4294967168  ;;  %v944_v0 = vld [vmem:[#allocation2 + $0x74] ss:$8 sps:$4 sm:$0xff]   ;;  %v948_v2 = vld [vmem:[#allocation2 + $0x70] ss:$8 sps:$4 sm:$0xff]   ;;  %vm179_vm0 = vcmask 1043456  }
  0x4a   : > { %v946_v1 = vld [vmem:[#allocation2 + $0x174] ss:$8 sps:$4 sm:$0xff]   ;;  %596 = vmatprep.subr.bf16.mxu0 %v944_v0  ;;  %v949_v3 = vld [vmem:[#allocation2 + $0x170] ss:$8 sps:$4 sm:$0xff]   ;;  %v950_v4 = vld [vmem:[#allocation2 + $0x64] ss:$8 sps:$4 sm:$0xff]  }
  0x4b   : > { %637 = vmatprep.subr.bf16.mxu1 %v946_v1  ;;  %597 = vmatpush1.bf16.msra.mxu0 %v948_v2  ;;  %v952_v5 = vld [vmem:[#allocation2 + $0x164] ss:$8 sps:$4 sm:$0xff]   ;;  %v954_v6 = vld [vmem:[#allocation2 + $0x60] ss:$8 sps:$4 sm:$0xff]   ;;  %v956_v8 = vld [vmem:[#allocation2 + $0x54] ss:$8 sps:$4 sm:$0xff]  }
  0x4c   : > { %638 = vmatpush1.bf16.msra.mxu1 %v949_v3  ;;  %598 = vmatprep.subr.bf16.mxu0 %v950_v4  ;;  %v955_v7 = vld [vmem:[#allocation2 + $0x160] ss:$8 sps:$4 sm:$0xff]   ;;  %v958_v9 = vld [vmem:[#allocation2 + $0x154] ss:$8 sps:$4 sm:$0xff]   ;;  %v960_v10 = vld [vmem:[#allocation2 + $0x50] ss:$8 sps:$4 sm:$0xff]  }
  0x4d   : > { %639 = vmatprep.subr.bf16.mxu1 %v952_v5  ;;  %v961_v11 = vld [vmem:[#allocation2 + $0x150] ss:$8 sps:$4 sm:$0xff]   ;;  %v962_v12 = vld [vmem:[#allocation2 + $0x44] ss:$8 sps:$4 sm:$0xff]   ;;  %v966_v14 = vld [vmem:[#allocation2 + $0x40] ss:$8 sps:$4 sm:$0xff]  }
  0x4e   : > { %v964_v13 = vld [vmem:[#allocation2 + $0x144] ss:$8 sps:$4 sm:$0xff]   ;;  %v967_v15 = vld [vmem:[#allocation2 + $0x140] ss:$8 sps:$4 sm:$0xff]   ;;  %v968_v16 = vld [vmem:[#allocation2 + $0x34] ss:$8 sps:$4 sm:$0xff]  }
  0x4f   : > { %599 = vmatpush1.bf16.msra.mxu0 %v954_v6  ;;  %v970_v17 = vld [vmem:[#allocation2 + $0x134] ss:$8 sps:$4 sm:$0xff]   ;;  %v972_v18 = vld [vmem:[#allocation2 + $0x30] ss:$8 sps:$4 sm:$0xff]   ;;  %v974_v20 = vld [vmem:[#allocation2 + $0x24] ss:$8 sps:$4 sm:$0xff]  }
  0x50   : > { %640 = vmatpush1.bf16.msra.mxu1 %v955_v7  ;;  %600 = vmatprep.subr.bf16.mxu0 %v956_v8  ;;  %v973_v19 = vld [vmem:[#allocation2 + $0x130] ss:$8 sps:$4 sm:$0xff]   ;;  %v976_v21 = vld [vmem:[#allocation2 + $0x124] ss:$8 sps:$4 sm:$0xff]   ;;  %v978_v22 = vld [vmem:[#allocation2 + $0x20] ss:$8 sps:$4 sm:$0xff]  }
  0x51   : > { %641 = vmatprep.subr.bf16.mxu1 %v958_v9  ;;  %v979_v23 = vld [vmem:[#allocation2 + $0x120] ss:$8 sps:$4 sm:$0xff]   ;;  %v980_v24 = vld [vmem:[#allocation2 + $0x14] ss:$8 sps:$4 sm:$0xff]   ;;  %v984_v26 = vld [vmem:[#allocation2 + $0x10] ss:$8 sps:$4 sm:$0xff]  }
  0x52   : > { %v982_v25 = vld [vmem:[#allocation2 + $0x114] ss:$8 sps:$4 sm:$0xff]   ;;  %v985_v27 = vld [vmem:[#allocation2 + $0x110] ss:$8 sps:$4 sm:$0xff]   ;;  %v986_v28 = vld [vmem:[#allocation2 + $0x4] ss:$8 sps:$4 sm:$0xff]  }
  0x53   : > { %601 = vmatpush1.bf16.msra.mxu0 %v960_v10  ;;  %v988_v29 = vld [vmem:[#allocation2 + $0x104] ss:$8 sps:$4 sm:$0xff]   ;;  %v990_v30 = vld [vmem:[#allocation2] ss:$8 sps:$4 sm:$0xff]   ;;  %v992_v32 = vld [vmem:[#allocation2 + $0xf4] ss:$8 sps:$4 sm:$0xff]  }
  0x54   : > { %642 = vmatpush1.bf16.msra.mxu1 %v961_v11  ;;  %602 = vmatprep.subr.bf16.mxu0 %v962_v12  ;;  %v991_v31 = vld [vmem:[#allocation2 + $0x100] ss:$8 sps:$4 sm:$0xff]   ;;  %v994_v33 = vld [vmem:[#allocation2 + $0x1f4] ss:$8 sps:$4 sm:$0xff]   ;;  %v996_v34 = vld [vmem:[#allocation2 + $0xf0] ss:$8 sps:$4 sm:$0xff]  }
  0x55   : > { %643 = vmatprep.subr.bf16.mxu1 %v964_v13  ;;  %v997_v35 = vld [vmem:[#allocation2 + $0x1f0] ss:$8 sps:$4 sm:$0xff]   ;;  %v998_v36 = vld [vmem:[#allocation2 + $0xe4] ss:$8 sps:$4 sm:$0xff]   ;;  %v1002_v38 = vld [vmem:[#allocation2 + $0xe0] ss:$8 sps:$4 sm:$0xff]  }
  0x56   : > { %v1000_v37 = vld [vmem:[#allocation2 + $0x1e4] ss:$8 sps:$4 sm:$0xff]   ;;  %v1003_v39 = vld [vmem:[#allocation2 + $0x1e0] ss:$8 sps:$4 sm:$0xff]   ;;  %v1004_v40 = vld [vmem:[#allocation2 + $0xd4] ss:$8 sps:$4 sm:$0xff]  }
  0x57   : > { %603 = vmatpush1.bf16.msra.mxu0 %v966_v14  ;;  %v1006_v41 = vld [vmem:[#allocation2 + $0x1d4] ss:$8 sps:$4 sm:$0xff]   ;;  %v1008_v42 = vld [vmem:[#allocation2 + $0xd0] ss:$8 sps:$4 sm:$0xff]   ;;  %v1010_v44 = vld [vmem:[#allocation2 + $0xc4] ss:$8 sps:$4 sm:$0xff]  }
  0x58   : > { %644 = vmatpush1.bf16.msra.mxu1 %v967_v15  ;;  %604 = vmatprep.subr.bf16.mxu0 %v968_v16  ;;  %v1009_v43 = vld [vmem:[#allocation2 + $0x1d0] ss:$8 sps:$4 sm:$0xff]   ;;  %v1012_v45 = vld [vmem:[#allocation2 + $0x1c4] ss:$8 sps:$4 sm:$0xff]   ;;  %v1014_v50 = vld [vmem:[#allocation2 + $0xc0] ss:$8 sps:$4 sm:$0xff]  }
  0x59   : > { %645 = vmatprep.subr.bf16.mxu1 %v970_v17  ;;  %v1317_v46 = vld [vmem:[%s1310_s8] sm:$0xff]  ;;  %v1016_v54 = vld [vmem:[#allocation2 + $0xb4] ss:$8 sps:$4 sm:$0xff]   ;;  %v1020_v62 = vld [vmem:[#allocation2 + $0xb0] ss:$8 sps:$4 sm:$0xff]   ;;  %s884_s15 = sshll.u32 %s1214_s13, 7 }
  0x5a   : > { %v177_v47 = vcombine.high %v1317_v46, %v1317_v46  ;;  %v180_v48 = vsel %vm179_vm0, %v1317_v46, 0.0  ;;  %v194_v49 = vsel %vm179_vm0, %v1317_v46, -inf  ;;  %v1015_v51 = vld [vmem:[#allocation2 + $0x1c0] ss:$8 sps:$4 sm:$0xff]   ;;  %v1018_v55 = vld [vmem:[#allocation2 + $0x1b4] ss:$8 sps:$4 sm:$0xff]   ;;  %s717_s22 = scalar_lea.hbm %s1367_s2, %s884_s15 }
  0x5b   : > { %605 = vmatpush1.bf16.msra.mxu0 %v972_v18  ;;  %v181_v52 = vrot.slane %v180_v48, 4  ;;  %v195_v53 = vrot.slane %v194_v49, 4  ;;  %v1021_v63 = vld [vmem:[#allocation2 + $0x1b0] ss:$8 sps:$4 sm:$0xff]   ;;  %v1022_v4 = vld [vmem:[#allocation2 + $0xa4] ss:$8 sps:$4 sm:$0xff]  }
  0x5c   : > { %646 = vmatpush1.bf16.msra.mxu1 %v973_v19  ;;  %606 = vmatprep.subr.bf16.mxu0 %v974_v20  ;;  %v187_v56 = vsel %vm179_vm0, %v177_v47, 0.0  ;;  %v201_v57 = vsel %vm179_vm0, %v177_v47, -inf  ;;  %v1024_v5 = vld [vmem:[#allocation2 + $0x1a4] ss:$8 sps:$4 sm:$0xff]   ;;  %v1026_v10 = vld [vmem:[#allocation2 + $0xa0] ss:$8 sps:$4 sm:$0xff]  }
  0x5d   : > { %647 = vmatprep.subr.bf16.mxu1 %v976_v21  ;;  %v188_v58 = vrot.slane %v187_v56, 4  ;;  %v202_v59 = vrot.slane %v201_v57, 4  ;;  %v182_v60 = vadd.f32 %v181_v52, %v180_v48  ;;  %v196_v61 = vmax.f32 %v194_v49, %v195_v53  ;;  %v1027_v11 = vld [vmem:[#allocation2 + $0x1a0] ss:$8 sps:$4 sm:$0xff]   ;;  %v1028_v14 = vld [vmem:[#allocation2 + $0x94] ss:$8 sps:$4 sm:$0xff]  }
  0x5e   : > { %v1030_v15 = vld [vmem:[#allocation2 + $0x194] ss:$8 sps:$4 sm:$0xff]   ;;  %v1032_v20 = vld [vmem:[#allocation2 + $0x90] ss:$8 sps:$4 sm:$0xff]   ;;  %s174_s17 = scalar_lea.vmem [#allocation7], %s810_s7  ;;  %s705_s23 = scalar_lea.sflag [#allocation4], %s1304_s6 }
  0x5f   : > { %607 = vmatpush1.bf16.msra.mxu0 %v978_v22  ;;  %v189_v0 = vadd.f32 %v188_v58, %v187_v56  ;;  %v203_v1 = vmax.f32 %v201_v57, %v202_v59  ;;  %v183_v2 = vrot.slane %v182_v60, 2  ;;  %v197_v3 = vrot.slane %v196_v61, 2  ;;  %v1033_v21 = vld [vmem:[#allocation2 + $0x190] ss:$8 sps:$4 sm:$0xff]   ;;  %s719_s18 = sshll.u32 %s174_s17, 4  ;;  %p1383_p8 = scmp.ne.s32.totalorder %s1377_s30, 0  ;;  %s720_s18 = int_to_ptr.vmem [resolvable:$true] %s719_s18 }
  0x60   : > { %648 = vmatpush1.bf16.msra.mxu1 %v979_v23  ;;  %608 = vmatprep.subr.bf16.mxu0 %v980_v24  ;;  %v1034_v24 = vld [vmem:[#allocation2 + $0x84] ss:$8 sps:$4 sm:$0xff]   ;;  %s1103_s24 = scalar_lea.vmem %s720_s18, 128  ;;  %s1177_s25 = smov [#allocation7]  }
  0x61   : > { %649 = vmatprep.subr.bf16.mxu1 %v982_v25  ;;  %v190_v6 = vrot.slane %v189_v0, 2  ;;  %v204_v7 = vrot.slane %v203_v1, 2  ;;  %v184_v8 = vadd.f32 %v183_v2, %v182_v60  ;;  %v198_v9 = vmax.f32 %v196_v61, %v197_v3  ;;  %v1036_v25 = vld [vmem:[#allocation2 + $0x184] ss:$8 sps:$4 sm:$0xff]   ;;  %p1104_p6 = scmp.ne.s32.totalorder %s720_s18, %s1103_s24  ;;  %s1107_s13 = sshll.u32 %s1177_s25, 4  ;;  %s1108_s13 = int_to_ptr.vmem [resolvable:$false] %s1107_s13 }
  0x62   : > { %s1109_s26 = scalar_lea.vmem %s1108_s13, 256  ;;  %p1110_p7 = scmp.lt.s32.totalorder %s720_s18, %s1108_s13 }
  0x63   : > { %609 = vmatpush1.bf16.msra.mxu0 %v984_v26  ;;  %v191_v12 = vadd.f32 %v190_v6, %v189_v0  ;;  %v205_v13 = vmax.f32 %v203_v1, %v204_v7  ;;  %v185_v18 = vrot.slane %v184_v8, 1  ;;  %v199_v19 = vrot.slane %v198_v9, 1  ;;  %p1105_p3 = pnand %p1104_p6, %p1383_p8  ;;  %p1111_p2 = scmp.lt.s32.totalorder %s1109_s26, %s1103_s24 }
  0x64   : > { %650 = vmatpush1.bf16.msra.mxu1 %v985_v27  ;;  %610 = vmatprep.subr.bf16.mxu0 %v986_v28 }
  0x65   : > { %651 = vmatprep.subr.bf16.mxu1 %v988_v29  ;;  %v192_v16 = vrot.slane %v191_v12, 1  ;;  %v206_v17 = vrot.slane %v205_v13, 1  ;;  %v186_v28 = vadd.f32 %v185_v18, %v184_v8  ;;  %v200_v29 = vmax.f32 %v198_v9, %v199_v19  ;;  %p1106_p11 = pneg %p1105_p3  ;;  %p1112_p13 = por %p1111_p2, %p1110_p7 }
  0x67   : > { %611 = vmatpush1.bf16.msra.mxu0 %v990_v30  ;;  %v193_v22 = vadd.f32 %v192_v16, %v191_v12  ;;  %v207_v23 = vmax.f32 %v205_v13, %v206_v17  ;;  %v1038_v30 = vld [vmem:[#allocation2 + $0x80] ss:$8 sps:$4 sm:$0xff]   ;;  %p1113_p0 = pnand %p1112_p13, %p1106_p11 }
  0x68   : > { %652 = vmatpush1.bf16.msra.mxu1 %v991_v31  ;;  %612 = vmatprep.subr.bf16.mxu0 %v992_v32  ;;  %v1039_v31 = vld [vmem:[#allocation2 + $0x180] ss:$8 sps:$4 sm:$0xff]   ;;  %v208_v32 = vpack.c.bf16 %v186_v28, %v186_v28 }
  0x69   : > { %653 = vmatprep.subr.bf16.mxu1 %v994_v33  ;;  %v209_v26 = vpack.c.bf16 %v193_v22, %v193_v22  ;;  %v211_v27 = vpack.c.bf16 %v207_v23, %v207_v23  ;;  %v210_v33 = vpack.c.bf16 %v200_v29, %v200_v29 }
  0x6b   : > { %613 = vmatpush2.bf16.msra.mxu0 %v996_v34  ;;  %628 = vmatprep.mubr.bf16.mxu0 %v209_v26 }
  0x6c   : > { %654 = vmatpush2.bf16.msra.mxu1 %v997_v35  ;;  %614 = vmatprep.subr.bf16.mxu0 %v998_v36 }
  0x6d   : > { %655 = vmatprep.subr.bf16.mxu1 %v1000_v37  ;;  %669 = vmatprep.mubr.bf16.mxu1 %v211_v27 }
  0x6f   : > { %615 = vmatpush2.bf16.msra.mxu0 %v1002_v38 }
  0x70   : > { %656 = vmatpush2.bf16.msra.mxu1 %v1003_v39  ;;  %616 = vmatprep.subr.bf16.mxu0 %v1004_v40 }
  0x71   : > { %657 = vmatprep.subr.bf16.mxu1 %v1006_v41 }
  0x73   : > { %617 = vmatpush2.bf16.msra.mxu0 %v1008_v42 }
  0x74   : > { %658 = vmatpush2.bf16.msra.mxu1 %v1009_v43  ;;  %618 = vmatprep.subr.bf16.mxu0 %v1010_v44 }
  0x75   : > { %659 = vmatprep.subr.bf16.mxu1 %v1012_v45 }
  0x77   : > { %619 = vmatpush2.bf16.msra.mxu0 %v1014_v50 }
  0x78   : > { %660 = vmatpush2.bf16.msra.mxu1 %v1015_v51  ;;  %620 = vmatprep.subr.bf16.mxu0 %v1016_v54  ;;  %v690_v51 = vlaneseq }
  0x79   : > { %661 = vmatprep.subr.bf16.mxu1 %v1018_v55 }
  0x7a   : > { %v691_v52 = vshrl.u32 %v690_v51, 7 }
  0x7b   : > { %621 = vmatpush2.bf16.msra.mxu0 %v1020_v62 }
  0x7c   : > { %662 = vmatpush2.bf16.msra.mxu1 %v1021_v63  ;;  %622 = vmatprep.subr.bf16.mxu0 %v1022_v4  ;;  %v692_v53 = vsub.s32 0, %v691_v52 }
  0x7d   : > { %663 = vmatprep.subr.bf16.mxu1 %v1024_v5 }
  0x7f   : > { %623 = vmatpush2.bf16.msra.mxu0 %v1026_v10 }
  0x80   : > { %664 = vmatpush2.bf16.msra.mxu1 %v1027_v11  ;;  %624 = vmatprep.subr.bf16.mxu0 %v1028_v14 }
  0x81   : > { %665 = vmatprep.subr.bf16.mxu1 %v1030_v15 }
  0x83   : > { %625 = vmatpush2.bf16.msra.mxu0 %v1032_v20 }
  0x84   : > { %666 = vmatpush2.bf16.msra.mxu1 %v1033_v21  ;;  %626 = vmatprep.subr.bf16.mxu0 %v1034_v24 }
  0x85   : > { %667 = vmatprep.subr.bf16.mxu1 %v1036_v25 }
  0x87   : > { %627 = vmatpush2.bf16.msra.mxu0 %v1038_v30 }
  0x88   : > { %668 = vmatpush2.bf16.msra.mxu1 %v1039_v31 }
  0x8a   : > { %629 = vmatmul.mubr.bf16.vlgmr.msra.gmra.mxu0 %v208_v32 }
  0x8b   : > { %670 = vmatmul.mubr.bf16.vlgmr.msra.gmra.mxu1 %v210_v33 }
 0x14a   : > { %v630_v34 = vpop.f32.mrf.mxu0 }
 0x14b   : > { %v671_v35 = vpop.f32.mrf.mxu1 }
 0x14c   : > { %v672_v36 = vadd.f32 %v671_v35, %v630_v34  ;;  %v632_v37 = vpop.f32.mrf.mxu0 }
 0x14d   : > { %v673_v38 = vpop.f32.mrf.mxu1 }
 0x14e   : > { %v876_v39 = vmul.f32 -1.442695, %v672_v36  ;;  %v674_v40 = vadd.f32 %v673_v38, %v632_v37  ;;  %v634_v41 = vpop.f32.mrf.mxu0 }
 0x14f   : > { %v675_v42 = vpop.f32.mrf.mxu1 }
 0x150   : > { %1041 = vpow2.f32 %v876_v39  ;;  %v877_v43 = vmul.f32 -1.442695, %v674_v40  ;;  %v635_v44 = vpop.f32.mrf.mxu0 }
 0x151   : > { %v676_v45 = vpop.f32.mrf.mxu1 }
 0x152   : > { %1043 = vpow2.f32 %v877_v43 }
 0x15d   : > { %v1042_v47 = vpop.eup %1041 }
 0x15e   : > { %v684_v48 = vadd.f32 1.0, %v1042_v47 }
 0x15f   : > { %v1044_v49 = vpop.eup %1043 }
 0x160   : > { %1045 = vrcp.f32 %v684_v48  ;;  %v685_v50 = vadd.f32 1.0, %v1044_v49 }
 0x162   : > { %1047 = vrcp.f32 %v685_v50 }
 0x16d   : > { %v1046_v54 = vpop.eup %1045 }
 0x16e   : > { %v693_v56 = vrot.slane %v1046_v54, %v692_v53 }
 0x16f   : > { %v1048_v55 = vpop.eup %1047 }
 0x170   : > { %v697_v57 = vrot.slane %v1048_v55, %v692_v53 }
 0x172   : > { %v700_v58 = vcombine.low %v693_v56, %v697_v57 }
 0x174   : > { %v702_v59 = vmul.f32 %v700_v58, %v1317_v46 }
 0x176   : > { %703 = vst [vmem:[%s174_s17] sm:$0xff] %v702_v59 }
 0x177   : > { %1116 = shalt.err (!%p1113_p0)
}
 0x178   : > { %s1117_s27 = scalar_lea.hbm %s717_s22, 128  ;;  %s1121_s4 = scalar_lea.hbm %s1367_s2, 256 }
 0x179   : > { %p1118_p5 = scmp.ne.s32.totalorder %s717_s22, %s1117_s27  ;;  %p1122_p10 = scmp.lt.s32.totalorder %s717_s22, %s1367_s2 }
 0x17a   : > { %p1123_p1 = scmp.lt.s32.totalorder %s1121_s4, %s1117_s27 }
 0x17b   : > { %p1119_p9 = pnand %p1118_p5, %p1383_p8 }
 0x17c   : > { %p1124_p4 = por %p1123_p1, %p1122_p10 }
 0x17d   : > { %p1120_p12 = pneg %p1119_p9 }
 0x17f   : > { %p1125_p6 = pnand %p1124_p4, %p1120_p12 }
 0x181   : > { %1128 = shalt.err (!%p1125_p6)
}
 0x182   : > { %891 = dma.vmem_to_hbm [thread:$0]  (%p1383_p8), %s720_s18, 128, %s717_s22, %s705_s23  }
 0x183 PF: > { %s731_s7 = sand.u32 1, %s1159_s9   ;;  %p1384_p3 = scmp.ne.s32.totalorder %s1373_s16, 0 }
 0x184   : > { %p1385_p11 = scmp.ge.s32.totalorder %s1171_s12, 2  ;;  %s732_s14 = scalar_lea.sflag [#allocation4], %s731_s7 }
 0x186   : > { %p902_p7 = pnand %p1385_p11, %p1384_p3 }
 0x188   : > { %p903_p2 = pneg %p902_p7 }
 0x18a   : > { %1154 = dma.done.wait (%p903_p2), %s732_s14, 128  }
 0x18b   : > { %1156 = vsyncadd (%p903_p2), %s732_s14, 4294967168  ;;  %p16_p13 = scmp.ge.s32.totalorder %s1247_s21, 4   ;;  %s1386_s9 = smov %s1163_s10 }
 0x18c   : > { %s1387_s10 = smov %s1167_s11  ;;  %s1388_s11 = smov %s1264_s29 }
 0x18d   : > { %s1389_s12 = smov %s1247_s21  ;;  %18 = sbr.rel (!%p16_p13) target bundleno = 6 (0x6), region = 78 }
 0x192   :  { %737 = vsyncpa [#allocation3], 1 }
 0x193   :  { %739 = vsyncpa [#allocation3 + $0x1], 1 }
 0x194   :  { %740 = vsyncpa [#allocation6], 1 }
 0x195   :  { %742 = vsyncpa [#allocation6 + $0x1], 1 }
 0x196   :  { %743 = vsyncpa [#allocation4], 1 }
 0x197   :  { %745 = vsyncpa [#allocation4 + $0x1], 1 }

</bundles_post_ra>
